<compile_context>
chip_gen: v6e
topology: v6e:2x2x1
jax: 0.10.0
libtpu: 0.0.40
codegen_flags: <defaults>
</compile_context>

<pallas_src>
import jax
import jax.numpy as jnp
from jax.experimental import pallas as pl
from jax.experimental.pallas import tpu as pltpu

_LANE = 128                    # vreg lane width (last-dim granularity)
_MAX_COLS = 2048               # prefer wide, lane-dense rows (unmasked vst)
_TILE_BYTES = 2 * 1024 * 1024  # per-buffer tile target (in+out dbl-buffered ≈ 8 MiB)
_MIN_PALLAS_ELEMS = 512        # below this, a fusable XLA sigmoid wins outright
_SPLIT_BYTES = 1 << 20         # split single-block cases >= 1 MiB so grid >= 2


def _round_up(a: int, b: int) -> int:
    return (a + b - 1) // b * b


def _sigmoid_kernel(x_ref, o_ref):
    # Elementwise hot path.  Compute natively for f32/bf16 (v6e/v7x have bf16
    # VPU/EUP; Mosaic widens for v5e automatically), upcast anything else.
    x = x_ref[...]
    if x.dtype not in (jnp.dtype(jnp.float32), jnp.dtype(jnp.bfloat16)):
        x = x.astype(jnp.float32)
    half = jnp.asarray(0.5, x.dtype)
    # sigmoid(x) == 0.5 * tanh(0.5 * x) + 0.5 : one EUP op + VPU mul/add.
    o_ref[...] = (half * jnp.tanh(half * x) + half).astype(o_ref.dtype)


def _pallas_sigmoid_2d(x2d: jax.Array, block_rows: int) -> jax.Array:
    rows, cols = x2d.shape
    grid = (pl.cdiv(rows, block_rows),)
    return pl.pallas_call(
        _sigmoid_kernel,
        out_shape=jax.ShapeDtypeStruct((rows, cols), x2d.dtype),
        grid_spec=pltpu.PrefetchScalarGridSpec(
            num_scalar_prefetch=0,
            grid=grid,
            in_specs=[pl.BlockSpec((block_rows, cols), lambda i: (i, 0))],
            out_specs=pl.BlockSpec((block_rows, cols), lambda i: (i, 0)),
        ),
        compiler_params=pltpu.CompilerParams(
            dimension_semantics=("parallel",)),
    )(x2d)


def my_model_forward(x: jax.Array) -> jax.Array:
    """Equivalent of MyModel.forward: elementwise sigmoid (any shape)."""
    orig_shape = x.shape
    n = x.size

    # Tiny workloads: pallas_call launch/DMA overhead dwarfs the work and the
    # custom-call boundary blocks XLA fusion — let XLA do it.
    if n < _MIN_PALLAS_ELEMS:
        return jax.nn.sigmoid(x)

    itemsize = jnp.dtype(x.dtype).itemsize
    sublane = max(8, 32 // itemsize)          # 8 for f32, 16 for bf16, 32 for int8/fp8

    # ---- Lane-dense geometry -------------------------------------------------
    # Widest cols (multiple of 128, capped at 2048) that still leaves >= sublane
    # rows for medium sizes; big inputs always get full 2048-wide rows.
    cols = (n // sublane) // _LANE * _LANE
    cols = max(_LANE, min(_MAX_COLS, cols))

    n_main = (n // cols) * cols               # main body processed by Pallas
    rows = n_main // cols

    # Row budget: keep each buffer around _TILE_BYTES.
    max_rows = max(sublane, (_TILE_BYTES // (cols * itemsize)) // sublane * sublane)

    if rows <= max_rows:
        if rows >= 2 * sublane and rows * cols * itemsize >= _SPLIT_BYTES:
            # Big enough to matter: give the parallel grid >= 2 steps (v7x megacore).
            block_rows = _round_up(pl.cdiv(rows, 2), sublane)
        else:
            block_rows = rows                 # block == full dim (always legal)
    else:
        block_rows = max_rows                 # multiple of sublane; last block may be ragged

    # ---- Main body through the pipelined Pallas kernel ------------------------
    flat = jnp.ravel(x)
    main = flat[:n_main].reshape(rows, cols)  # no-copy when n_main == n
    out_main = _pallas_sigmoid_2d(main, block_rows)

    if n_main == n:
        return out_main.reshape(orig_shape)

    # < cols tail: plain XLA sigmoid on the slice (cheaper than pad + unpad).
    tail = jax.nn.sigmoid(flat[n_main:])
    return jnp.concatenate([out_main.reshape(-1), tail]).reshape(orig_shape)


if __name__ == "__main__":
    key = jax.random.PRNGKey(0)
    k1, k2, k3 = jax.random.split(key, 3)

    # 1) Pallas path, exact fit: 1024 elements -> NCHW (256, 1, 2, 2),
    #    in-kernel view (8, 128), no padding / tail.
    raw1 = jax.random.normal(k1, (1024,), dtype=jnp.float32)
    x1 = jnp.reshape(raw1, (-1, 1, 2, 2))          # (256, 1, 2, 2)
    out1 = my_model_forward(x1)
    jax.block_until_ready(out1)
    assert out1.shape == x1.shape and out1.dtype == x1.dtype
    assert jnp.allclose(out1, jax.nn.sigmoid(x1), atol=2e-6), "mismatch (case 1)"

    # 2) Pallas path with an XLA-handled tail (1200 = 9*128 + 48 elements).
    raw2 = jax.random.normal(k2, (1200,), dtype=jnp.float32)
    x2 = jnp.reshape(raw2, (-1, 1, 2, 2))          # (300, 1, 2, 2)
    out2 = my_model_forward(x2)
    jax.block_until_ready(out2)
    assert out2.shape == x2.shape and out2.dtype == x2.dtype
    assert jnp.allclose(out2, jax.nn.sigmoid(x2), atol=2e-6), "mismatch (case 2)"

    # 3) The literal case from the original script (16 elements): small-input
    #    fallback — a pallas_call here would be pure overhead.
    raw3 = jax.random.normal(k3, (16,), dtype=jnp.float32)
    x3 = jnp.reshape(raw3, (-1, 1, 2, 2))          # (4, 1, 2, 2)
    out3 = my_model_forward(x3)
    jax.block_until_ready(out3)
    assert jnp.allclose(out3, jax.nn.sigmoid(x3), atol=2e-6), "mismatch (case 3)"

    print("KERNEL_OK")
</pallas_src>

<mosaic_0001>
module attributes {stable_mosaic.version = 11 : i64} {
  func.func @_sigmoid_kernel(%arg0: i32, %arg1: memref<8x128xf32, #tpu.memory_space<vmem>>, %arg2: memref<8x128xf32, #tpu.memory_space<vmem>>) attributes {dimension_semantics = [#tpu.dimension_semantics<parallel>], iteration_bounds = array<i64: 1>, scalar_prefetch = 0 : i64, scratch_operands = 0 : i64, tpu.core_type = #tpu.core_type<tc>, window_params = [{transform_indices = @transform_0, window_bounds = array<i64: 8, 128>}, {transform_indices = @transform_1, window_bounds = array<i64: 8, 128>}]} {
    %c0 = arith.constant 0 : index
    %c0_0 = arith.constant 0 : index
    %0 = vector.load %arg1[%c0, %c0_0] : memref<8x128xf32, #tpu.memory_space<vmem>>, vector<8x128xf32>
    %cst = arith.constant 5.000000e-01 : f32
    %1 = vector.broadcast %cst : f32 to vector<8x128xf32>
    %2 = arith.mulf %1, %0 : vector<8x128xf32>
    %3 = math.tanh %2 : vector<8x128xf32>
    %cst_1 = arith.constant 5.000000e-01 : f32
    %4 = vector.broadcast %cst_1 : f32 to vector<8x128xf32>
    %5 = arith.mulf %4, %3 : vector<8x128xf32>
    %cst_2 = arith.constant 5.000000e-01 : f32
    %6 = vector.broadcast %cst_2 : f32 to vector<8x128xf32>
    %7 = arith.addf %5, %6 : vector<8x128xf32>
    %c0_3 = arith.constant 0 : index
    %c0_4 = arith.constant 0 : index
    %8 = vector.load %arg2[%c0_3, %c0_4] : memref<8x128xf32, #tpu.memory_space<vmem>>, vector<8x128xf32>
    tpu.vector_store %arg2[%c0_3, %c0_4], %7 {strides = array<i32>} : memref<8x128xf32, #tpu.memory_space<vmem>>, vector<8x128xf32>,
    return
  }
  func.func @transform_0(%arg0: i32) -> (i32, i32) {
    %c0_i32 = arith.constant 0 : i32
    %c0_i32_0 = arith.constant 0 : i32
    return %arg0, %c0_i32 : i32, i32
  }
  func.func @transform_1(%arg0: i32) -> (i32, i32) {
    %c0_i32 = arith.constant 0 : i32
    %c0_i32_0 = arith.constant 0 : i32
    return %arg0, %c0_i32 : i32, i32
  }
}

</mosaic_0001>

<bundles_post_ra>
// kernel: tpu_custom_call.1
= control target key start
LH: loop header
LB: loop body
LE: loop exit
PB: predicated region body
PF: predicated region fallthrough
CT: control target
= control target key end

     0   :  { %6 = vsyncpa [#allocation3], 0  ;;  %s108_s0 = inlined_call_operand.hbm [shape: f32[8,128], index: 0, kind: input, shape index: {}]   ;;  %s109_s1 = inlined_call_operand.hbm [shape: f32[8,128], index: 1, kind: output, shape index: {}]  }
   0x1   :  { %7 = vsyncpa [#allocation4], 0  ;;  %s90_s6 = smov [#allocation2]  }
   0x2   :  { %s14_s7 = sshll.u32 %s90_s6, 4  ;;  %s15_s7 = int_to_ptr.vmem [resolvable:$true] %s14_s7 }
   0x3   :  { %s54_s8 = scalar_lea.vmem %s15_s7, 128  ;;  %p59_p1 = scmp.lt.s32.totalorder %s15_s7, %s15_s7 }
   0x4   :  { %p55_p0 = scmp.ne.s32.totalorder %s15_s7, %s54_s8  ;;  %p60_p2 = scmp.lt.s32.totalorder %s54_s8, %s54_s8 }
   0x6   :  { %p61_p3 = por %p60_p2, %p59_p1 }
   0x8   :  { %p62_p4 = pnand %p61_p3, %p55_p0 }
   0xa   :  { %65 = shalt.err (!%p62_p4)
}
   0xb   :  { %17 = dma.hbm_to_vmem [thread:$0]  %s108_s0, 128, %s15_s7, [#allocation3]  }
   0xc   :  { %86 = dma.done.wait [#allocation3], 128  }
   0xd   :  { %87 = vsyncadd [#allocation3], 4294967168  ;;  %v21_v0 = vld [vmem:[#allocation2] sm:$0xff]  ;;  %s91_s11 = smov [#allocation5]  }
   0xe   :  { %v22_v1 = vmul.f32 0.5, %v21_v0  ;;  %s33_s12 = sshll.u32 %s91_s11, 4  ;;  %s34_s12 = int_to_ptr.vmem [resolvable:$true] %s33_s12 }
   0xf   :  { %s66_s13 = scalar_lea.vmem %s34_s12, 128  ;;  %p71_p6 = scmp.lt.s32.totalorder %s34_s12, %s34_s12 }
  0x10   :  { %44 = vtanh.f32 %v22_v1  ;;  %p67_p5 = scmp.ne.s32.totalorder %s34_s12, %s66_s13  ;;  %p72_p7 = scmp.lt.s32.totalorder %s66_s13, %s66_s13 }
  0x12   :  { %p73_p8 = por %p72_p7, %p71_p6 }
  0x14   :  { %p74_p9 = pnand %p73_p8, %p67_p5 }
  0x1d   :  { %v45_v2 = vpop.eup %44 }
  0x1e   :  { %v24_v3 = vmul.f32 0.5, %v45_v2 }
  0x20   :  { %v25_v4 = vadd.f32 0.5, %v24_v3 }
  0x22   :  { %26 = vst [vmem:[#allocation5] sm:$0xff] %v25_v4 }
  0x23   :  { %77 = shalt.err (!%p74_p9)
}
  0x24   :  { %36 = dma.vmem_to_hbm [thread:$0]  %s34_s12, 128, %s109_s1, [#allocation4]  }
  0x25   :  { %88 = dma.done.wait [#allocation4], 128  }
  0x26   :  { %89 = vsyncadd [#allocation4], 4294967168 }
  0x27   :  { %40 = vsyncpa [#allocation3], 1 }
  0x28   :  { %41 = vsyncpa [#allocation4], 1 }

</bundles_post_ra>
